<compile_context>
chip_gen: v5e
topology: v5e:2x2
jax: 0.10.0
libtpu: 0.0.40
codegen_flags: <defaults>
</compile_context>

<pallas_src>
import functools

import jax
import jax.numpy as jnp
from jax.experimental import pallas as pl
from jax.experimental.pallas import tpu as pltpu


# ------------------------------ small-B path -------------------------------- #
def _weighted_avg_small_kernel(losses_ref, nums_ref, out_ref):
    # losses_ref: (K, B) any float — loss keys on sublanes, batches on lanes.
    # nums_ref:   (1, B) int/float — per-batch sample counts.
    # out_ref:    (K, 1) f32       — per-key weighted means.
    losses = losses_ref[...].astype(jnp.float32)          # (K, B)
    nums = nums_ref[...].astype(jnp.float32)               # (1, B)  (== .float())
    num_sum = jnp.sum(losses * nums, axis=-1, keepdims=True)   # (K, 1)
    den_sum = jnp.sum(nums, axis=-1, keepdims=True)            # (1, 1)
    # Plain divide for bit-parity with the torch reference.
    out_ref[...] = num_sum / den_sum


def _compute_avg_losses_small(losses, nums_2d):
    K, _ = losses.shape
    out = pl.pallas_call(
        _weighted_avg_small_kernel,
        out_shape=jax.ShapeDtypeStruct((K, 1), jnp.float32),
        # Gridless: whole arrays resident in VMEM, no grid-step machinery.
        in_specs=[
            pl.BlockSpec(memory_space=pltpu.MemorySpace.VMEM),
            pl.BlockSpec(memory_space=pltpu.MemorySpace.VMEM),
        ],
        out_specs=pl.BlockSpec(memory_space=pltpu.MemorySpace.VMEM),
    )(losses, nums_2d)
    return out[:, 0]


# ------------------------------ large-B path -------------------------------- #
def _weighted_avg_tiled_kernel(losses_ref, nums_ref, out_ref, den_acc,
                               *, b_total, tile_b):
    # losses_ref: (K, tile_b)   nums_ref: (1, tile_b)
    # out_ref:    (K, 1) f32 — resident across the reduction axis (accumulator).
    # den_acc:    VMEM (1, 1) f32.
    j = pl.program_id(0)

    @pl.when(j == 0)
    def _init():
        out_ref[...] = jnp.zeros_like(out_ref)
        den_acc[...] = jnp.zeros_like(den_acc)

    # In-kernel tail mask replaces wrapper-side jnp.pad.  b_total / tile_b are
    # Python ints, so `valid` is a cheap scalar; the last block's out-of-range
    # lanes were auto-DMA'd with unspecified contents, so the mask is applied
    # to nums AND to the product (never multiply garbage into the sums).
    valid = b_total - j * tile_b
    lane = jax.lax.broadcasted_iota(jnp.int32, (1, tile_b), 1)
    mask = lane < valid                                     # (1, tile_b)

    losses = losses_ref[...].astype(jnp.float32)            # (K, tile_b)
    nums = jnp.where(mask, nums_ref[...].astype(jnp.float32), 0.0)
    weighted = jnp.where(mask, losses * nums, 0.0)          # (K, tile_b)

    out_ref[...] += jnp.sum(weighted, axis=-1, keepdims=True)   # (K, 1)
    den_acc[...] += jnp.sum(nums, axis=-1, keepdims=True)        # (1, 1)

    @pl.when(j == pl.num_programs(0) - 1)
    def _finalize():
        out_ref[...] = out_ref[...] / den_acc[...]


def _compute_avg_losses_tiled(losses, nums_2d, tile_b):
    assert tile_b % 128 == 0, "tile_b must be a multiple of 128 lanes"
    K, B = losses.shape
    nb = pl.cdiv(B, tile_b)
    kernel = functools.partial(_weighted_avg_tiled_kernel,
                               b_total=B, tile_b=tile_b)
    out = pl.pallas_call(
        kernel,
        out_shape=jax.ShapeDtypeStruct((K, 1), jnp.float32),
        grid=(nb,),
        in_specs=[
            pl.BlockSpec((K, tile_b), lambda j: (0, j)),
            pl.BlockSpec((1, tile_b), lambda j: (0, j)),
        ],
        out_specs=pl.BlockSpec((K, 1), lambda j: (0, 0)),
        scratch_shapes=[pltpu.VMEM((1, 1), jnp.float32)],
        compiler_params=pltpu.CompilerParams(
            dimension_semantics=("arbitrary",)),  # B is the reduction axis
    )(losses, nums_2d)
    return out[:, 0]


# --------------------- optional: nums stacked as last row ------------------- #
def _weighted_avg_stacked_kernel(data_ref, out_ref, den_acc,
                                 *, n_keys, b_total, tile_b):
    # data_ref: (K+1, tile_b) f32 — rows 0..K-1 are losses, row K is nums.
    j = pl.program_id(0)

    @pl.when(j == 0)
    def _init():
        out_ref[...] = jnp.zeros_like(out_ref)
        den_acc[...] = jnp.zeros_like(den_acc)

    valid = b_total - j * tile_b
    lane = jax.lax.broadcasted_iota(jnp.int32, (1, tile_b), 1)
    mask = lane < valid

    data = data_ref[...].astype(jnp.float32)        # (K+1, tile_b)
    losses = data[:n_keys, :]                       # (K, tile_b)
    nums = jnp.where(mask, data[n_keys:, :], 0.0)   # (1, tile_b)
    weighted = jnp.where(mask, losses * nums, 0.0)

    out_ref[...] += jnp.sum(weighted, axis=-1, keepdims=True)
    den_acc[...] += jnp.sum(nums, axis=-1, keepdims=True)

    @pl.when(j == pl.num_programs(0) - 1)
    def _finalize():
        out_ref[...] = out_ref[...] / den_acc[...]


def compute_avg_losses_stacked(stacked: jax.Array, *, tile_b: int = 65536) -> jax.Array:
    """Single-stream variant for callers that build a (K+1, B) array upstream
    (last row = per-batch counts, already float).  One DMA per step, no
    sublane-padding waste for a separate nums tile."""
    assert tile_b % 128 == 0
    K1, B = stacked.shape
    K = K1 - 1
    nb = pl.cdiv(B, tile_b)
    kernel = functools.partial(_weighted_avg_stacked_kernel,
                               n_keys=K, b_total=B, tile_b=tile_b)
    out = pl.pallas_call(
        kernel,
        out_shape=jax.ShapeDtypeStruct((K, 1), jnp.float32),
        grid=(nb,),
        in_specs=[pl.BlockSpec((K1, tile_b), lambda j: (0, j))],
        out_specs=pl.BlockSpec((K, 1), lambda j: (0, 0)),
        scratch_shapes=[pltpu.VMEM((1, 1), jnp.float32)],
        compiler_params=pltpu.CompilerParams(
            dimension_semantics=("arbitrary",)),
    )(stacked)
    return out[:, 0]


# -------------------------------- wrapper ------------------------------------ #
def compute_avg_losses(losses: jax.Array, nums: jax.Array,
                       *, tile_b: int = 65536,
                       small_b_threshold: int = 65536) -> jax.Array:
    """Pallas equivalent of compute_avg_dict over stacked loss keys.

    losses: (K, B) float  — per-key, per-batch detached losses.
    nums:   (B,)   int/f32 — per-batch sample counts (batch[b].size(0)).
    returns (K,)   float32 — weighted average per loss key.
    Note: sum(nums) == 0 divides by zero exactly as the torch reference would.
    """
    K, B = losses.shape
    nums_2d = nums.reshape(1, B)  # metadata-only; cast to f32 happens in-kernel
    if B <= small_b_threshold:
        return _compute_avg_losses_small(losses, nums_2d)
    return _compute_avg_losses_tiled(losses, nums_2d, tile_b)


# TODO(synk): beam-search SequenceGenerator.generate, the model forward/loss_fn
#             eval loop, pickle/file IO, distributed synchronize(), vocab string
#             decoding, and the NLG metrics (bert_score/bleu/meteor/rouge/cider)
#             are host / library logic with no Pallas tensor equivalent.


if __name__ == "__main__":
    key = jax.random.PRNGKey(0)
    k1, k2, k3, k4 = jax.random.split(key, 4)

    # Small shapes consistent with EvalB: 4 loss keys, 16 validation batches.
    K, B = 4, 16
    losses = jax.random.uniform(k1, (K, B), dtype=jnp.float32)
    nums = jax.random.randint(k2, (B,), minval=1, maxval=9, dtype=jnp.int32)

    val_loss = jax.block_until_ready(compute_avg_losses(losses, nums))

    # Pure-JAX reference (matches compute_avg_dict semantics).
    nums_f = nums.astype(jnp.float32)
    ref = jnp.sum(losses * nums_f[None, :], axis=-1) / jnp.sum(nums_f)
    assert val_loss.shape == (K,)
    assert jnp.allclose(val_loss, ref, rtol=1e-5, atol=1e-6), (val_loss, ref)

    # Exercise the tiled accumulator path (forced via threshold), including the
    # in-kernel ragged-tail mask (640 % 256 != 0 -> last tile is partial).
    K2, B2 = 4, 640
    losses2 = jax.random.uniform(k3, (K2, B2), dtype=jnp.float32)
    nums2 = jax.random.randint(k4, (B2,), minval=1, maxval=9, dtype=jnp.int32)
    val_loss2 = jax.block_until_ready(
        compute_avg_losses(losses2, nums2, tile_b=256, small_b_threshold=0))
    nums2_f = nums2.astype(jnp.float32)
    ref2 = jnp.sum(losses2 * nums2_f[None, :], axis=-1) / jnp.sum(nums2_f)
    assert val_loss2.shape == (K2,)
    assert jnp.allclose(val_loss2, ref2, rtol=1e-4, atol=1e-5), (val_loss2, ref2)

    # Exercise the single-stream stacked variant (nums folded in as last row).
    stacked = jnp.concatenate([losses2, nums2_f[None, :]], axis=0)  # (K+1, B)
    val_loss3 = jax.block_until_ready(
        compute_avg_losses_stacked(stacked, tile_b=256))
    assert val_loss3.shape == (K2,)
    assert jnp.allclose(val_loss3, ref2, rtol=1e-4, atol=1e-5), (val_loss3, ref2)

    print("KERNEL_OK")
</pallas_src>

<mosaic_0001>
module attributes {stable_mosaic.version = 11 : i64} {
  func.func @_weighted_avg_small_kernel(%arg0: memref<4x16xf32, #tpu.memory_space<vmem>>, %arg1: memref<1x16xi32, #tpu.memory_space<vmem>>, %arg2: memref<4x1xf32, #tpu.memory_space<vmem>>) attributes {dimension_semantics = [], scalar_prefetch = 0 : i64, scratch_operands = 0 : i64, tpu.core_type = #tpu.core_type<tc>} {
    %c0 = arith.constant 0 : index
    %c0_0 = arith.constant 0 : index
    %0 = vector.load %arg0[%c0, %c0_0] : memref<4x16xf32, #tpu.memory_space<vmem>>, vector<4x16xf32>
    %c0_1 = arith.constant 0 : index
    %c0_2 = arith.constant 0 : index
    %1 = vector.load %arg1[%c0_1, %c0_2] : memref<1x16xi32, #tpu.memory_space<vmem>>, vector<1x16xi32>
    %2 = arith.sitofp %1 : vector<1x16xi32> to vector<1x16xf32>
    %3 = vector.broadcast %2 : vector<1x16xf32> to vector<4x16xf32>
    %4 = arith.mulf %0, %3 : vector<4x16xf32>
    %cst = arith.constant dense<0.000000e+00> : vector<4xf32>
    %5 = vector.multi_reduction <add>, %4, %cst [1] : vector<4x16xf32> to vector<4xf32>
    %6 = vector.shape_cast %5 : vector<4xf32> to vector<4x1xf32>
    %cst_3 = arith.constant dense<0.000000e+00> : vector<1xf32>
    %7 = vector.multi_reduction <add>, %2, %cst_3 [1] : vector<1x16xf32> to vector<1xf32>
    %8 = vector.shape_cast %7 : vector<1xf32> to vector<1x1xf32>
    %9 = vector.broadcast %8 : vector<1x1xf32> to vector<4x1xf32>
    %10 = arith.divf %6, %9 : vector<4x1xf32>
    %c0_4 = arith.constant 0 : index
    %c0_5 = arith.constant 0 : index
    %11 = vector.load %arg2[%c0_4, %c0_5] : memref<4x1xf32, #tpu.memory_space<vmem>>, vector<4x1xf32>
    tpu.vector_store %arg2[%c0_4, %c0_5], %10 {strides = array<i32>} : memref<4x1xf32, #tpu.memory_space<vmem>>, vector<4x1xf32>,
    return
  }
}

</mosaic_0001>

<bundles_post_ra>
// kernel: tpu_custom_call.1
= control target key start
LH: loop header
LB: loop body
LE: loop exit
PB: predicated region body
PF: predicated region fallthrough
CT: control target
= control target key end

     0   :  { %7 = vsyncpa [#allocation3], 0  ;;  %s160_s0 = inlined_call_operand.hbm [shape: f32[4,16], index: 0, kind: input, shape index: {}]   ;;  %s161_s1 = inlined_call_operand.hbm [shape: s32[1,16], index: 1, kind: input, shape index: {}]   ;;  %s162_s2 = inlined_call_operand.vmem [shape: f32[4,1], index: 2, kind: output, shape index: {}]  }
   0x1   :  { %s14_s11 = sshll.u32 %s160_s0, 4  ;;  %s15_s11 = int_to_ptr.hbm [resolvable:$true] %s14_s11 }
   0x2   :  { %8 = vsyncpa [#allocation5], 0  ;;  %s134_s12 = smov [#allocation2]   ;;  %s25_s16 = sshll.u32 %s161_s1, 4  ;;  %s26_s16 = int_to_ptr.hbm [resolvable:$true] %s25_s16 }
   0x3   :  { %s16_s13 = sshll.u32 %s134_s12, 4  ;;  %s135_s17 = smov [#allocation4]   ;;  %s17_s13 = int_to_ptr.vmem [resolvable:$true] %s16_s13 }
   0x4   :  { %19 = dma.hbm_to_vmem [thread:$0]  %s15_s11, 64, %s17_s13, [#allocation3]  }
   0x5   :  { %s27_s18 = sshll.u32 %s135_s17, 4  ;;  %s28_s18 = int_to_ptr.vmem [resolvable:$true] %s27_s18 }
   0x6   :  { %30 = dma.hbm_to_vmem [thread:$0]  %s26_s16, 16, %s28_s18, [#allocation5]  }
   0x7   :  { %130 = dma.done.wait [#allocation3], 64  }
   0x8   :  { %131 = vsyncadd [#allocation3], 4294967232 }
   0x9   :  { %132 = dma.done.wait [#allocation5], 16  }
   0xa   :  { %133 = vsyncadd [#allocation5], 4294967280  ;;  %v40_v0 = vld [vmem:[#allocation4] sm:$0x1]  ;;  %vm50_vm0 = vcmask 122880   ;;  %vm46_vm1 = vcmask 125952  }
   0xb   :  { %v41_v1 = vcvt.s32.f32 %v40_v0  ;;  %v39_v2 = vld [vmem:[#allocation2] sm:$0xf]  ;;  %vm70_vm6 = vcmask 3072  }
   0xd   :  { %v51_v3 = vsel %vm50_vm0, %v41_v1, 0.0  ;;  %v43_v4 = vperm.slane %v41_v1, 0 }
   0xe   :  { %52 = vadd.xlane.f32.xlu0 %v51_v3 }
   0xf   :  { %v45_v5 = vmul.f32 %v43_v4, %v39_v2 }
  0x11   :  { %v47_v6 = vsel %vm46_vm1, %v45_v5, 0.0 }
  0x16   :  { %48 = vadd.xlane.f32.xlu0 %v47_v6 }
  0x81   :  { %v53_v7 = vpop.xlane.xlu0 %52 }
  0x82   :  { %v54_v8 = vperm.slane %v53_v7, 0 }
  0x84   :  { %80 = vrcp.f32 %v54_v8  ;;  %v66_v12 = vand.u32 2147483648, %v54_v8  ;;  %v64_v14 = vand.u32 2147483647, %v54_v8  ;;  %vm60_vm3 = vweird.f32 %v54_v8 }
  0x86   :  { %v67_v16 = vor.u32 1.1754944e-38, %v66_v12  ;;  %vm65_vm5 = vcmp.eq.f32.partialorder %v64_v14, 8.507059e+37 }
  0x89   :  { %v49_v17 = vpop.xlane.xlu0 %48 }
  0x8a   :  { %v81_v9 = vpop.eup %80 }
  0x8b   :  { %v56_v10 = vmul.f32 %v81_v9, %v54_v8  ;;  %vm61_vm2 = vweird.f32 %v81_v9 }
  0x8c   :  { %vm62_vm4 = vmor %vm60_vm3, %vm61_vm2 }
  0x8d   :  { %v57_v11 = vsub.f32 1.0, %v56_v10 }
  0x8f   :  { %v58_v13 = vmul.f32 %v81_v9, %v57_v11 }
  0x91   :  { %v59_v15 = vadd.f32 %v81_v9, %v58_v13 }
  0x93   :  { %v63_v18 = vsel %vm62_vm4, %v81_v9, %v59_v15 }
  0x94   :  { %v68_v19 = vsel %vm65_vm5, %v67_v16, %v63_v18 }
  0x95   :  { %v69_v20 = vmul.f32 %v68_v19, %v49_v17 }
  0x97   :  { %71 = vst.msk [vmem:[%s162_s2] sm:$0xf] %vm70_vm6, %v69_v20 }
  0x98   :  { %76 = vsyncpa [#allocation3], 1 }
  0x99   :  { %77 = vsyncpa [#allocation5], 1 }

</bundles_post_ra>
